<compile_context>
chip_gen: v6e
topology: v6e:2x2x1
jax: 0.10.0
libtpu: 0.0.40
codegen_flags: <defaults>
</compile_context>

<pallas_src>
import math
import functools

import jax
import jax.numpy as jnp
import numpy as np
from jax.experimental import pallas as pl
from jax.experimental.pallas import tpu as pltpu

_TWO_PI = 2.0 * math.pi
_LANE = 128
_MAX_TS = 512          # sublane-rows per block: 3 * 512 * 128 * 4B = 768 KiB / buffer


def _round_up(a: int, b: int) -> int:
    return ((a + b - 1) // b) * b


# ----------------------------------------------------------------------------
# Pallas kernels — pure element-wise VPU work on dense (TS, 128) channel tiles.
# Block shape is (1, 3, TS, 128): channels sit on a leading (non-vreg) axis.
# ----------------------------------------------------------------------------
def _hsv_to_rgb_kernel(x_ref, o_ref):
    x = x_ref[...].astype(jnp.float32)          # (1, 3, TS, 128)
    h = x[0, 0] * (1.0 / _TWO_PI)               # kornia: h in [0, 2*pi]
    s = x[0, 1]
    v = x[0, 2]

    h6 = (h * 6.0) % 6.0                        # single float remainder
    hi = jnp.floor(h6)                          # sector index 0..5 (float-valued int)
    f = h6 - hi

    one = jnp.float32(1.0)
    p = v * (one - s)
    q = v * (one - f * s)
    t = v * (one - (one - f) * s)

    # hoist sector masks once, reuse for r / g / b
    m0 = hi == 0.0
    m1 = hi == 1.0
    m2 = hi == 2.0
    m3 = hi == 3.0
    m4 = hi == 4.0

    def _sel(c0, c1, c2, c3, c4, c5):
        out = jnp.where(m4, c4, c5)
        out = jnp.where(m3, c3, out)
        out = jnp.where(m2, c2, out)
        out = jnp.where(m1, c1, out)
        out = jnp.where(m0, c0, out)
        return out

    # same gather table as kornia.color.hsv_to_rgb
    r = _sel(v, q, p, p, t, v)
    g = _sel(t, v, v, q, p, p)
    b = _sel(p, p, t, v, v, q)

    o_ref[0, 0, :, :] = r.astype(o_ref.dtype)   # dense (TS,128) unmasked stores
    o_ref[0, 1, :, :] = g.astype(o_ref.dtype)
    o_ref[0, 2, :, :] = b.astype(o_ref.dtype)


def _xyz_to_rgb_kernel(x_ref, o_ref):
    xc = x_ref[...].astype(jnp.float32)         # (1, 3, TS, 128)
    X = xc[0, 0]
    Y = xc[0, 1]
    Z = xc[0, 2]
    # kornia.color.xyz_to_rgb constants
    r = 3.2404813432005266 * X + (-1.5371515162713185) * Y + (-0.498536326168888) * Z
    g = (-0.9692549499965682) * X + 1.8759900014898907 * Y + 0.0415559265582928 * Z
    b = 0.0556466391351772 * X + (-0.2040413383665112) * Y + 1.0573110696453443 * Z

    o_ref[0, 0, :, :] = r.astype(o_ref.dtype)
    o_ref[0, 1, :, :] = g.astype(o_ref.dtype)
    o_ref[0, 2, :, :] = b.astype(o_ref.dtype)


_KERNELS = {
    "hsv": _hsv_to_rgb_kernel,
    "xyz": _xyz_to_rgb_kernel,
    # TODO(synk): 'luv' (luv -> xyz -> rgb with piecewise nonlinearity) not ported.
}


# ----------------------------------------------------------------------------
# Wrapper: re-layout to (N, 3, rows, 128), tile rows, call kernel, restore.
# ----------------------------------------------------------------------------
@functools.partial(jax.jit, static_argnames=("enable", "space"))
def dvr_color_from_space(x, *, enable: bool = True, space: str = "hsv"):
    """x: (N, C, H, W). Converts channels 0:3 from `space` back to RGB."""
    space = space.lower()
    if (not enable) or space == "rgb":
        return x
    if space not in _KERNELS:
        raise NotImplementedError(f"space {space!r} not implemented in Pallas port")

    N, C, H, W = x.shape
    HW = H * W

    rows = -(-HW // _LANE)                      # ceil(HW / 128)
    TS = min(_MAX_TS, _round_up(rows, 8))       # sublane-rows per block (mult. of 8)
    rows_pad = _round_up(rows, TS)
    HW_pad = rows_pad * _LANE

    rgb = x[:, 0:3].reshape(N, 3, HW)
    if HW_pad != HW:
        # padded pixels are zeros: harmless for both conversions, sliced off below
        rgb = jnp.pad(rgb, ((0, 0), (0, 0), (0, HW_pad - HW)))
    rgb = rgb.reshape(N, 3, rows_pad, _LANE)

    grid = (N, rows_pad // TS)
    block = (1, 3, TS, _LANE)

    out = pl.pallas_call(
        _KERNELS[space],
        out_shape=jax.ShapeDtypeStruct((N, 3, rows_pad, _LANE), x.dtype),
        grid=grid,
        in_specs=[pl.BlockSpec(block, lambda n, t: (n, 0, t, 0))],
        out_specs=pl.BlockSpec(block, lambda n, t: (n, 0, t, 0)),
        compiler_params=pltpu.CompilerParams(
            dimension_semantics=("parallel", "parallel"),
        ),
    )(rgb)

    out = out.reshape(N, 3, HW_pad)[:, :, :HW].reshape(N, 3, H, W)
    if C > 3:
        # TODO(synk): with caller-side buffer donation this copy could be removed
        # via input_output_aliases; kept as a plain concat for safety here.
        out = jnp.concatenate([out, x[:, 3:]], axis=1)
    return out


# ----------------------------------------------------------------------------
# Pure-JAX reference (mirrors kornia) for correctness checking.
# ----------------------------------------------------------------------------
def _reference(x, space):
    if space == "hsv":
        h = x[:, 0] / _TWO_PI
        s = x[:, 1]
        v = x[:, 2]
        h6 = h * 6.0
        hi = jnp.floor(h6) % 6.0
        f = (h6 % 6.0) - hi
        p = v * (1.0 - s)
        q = v * (1.0 - f * s)
        t = v * (1.0 - (1.0 - f) * s)

        def sel(c0, c1, c2, c3, c4, c5):
            out = c5
            for k, c in ((4.0, c4), (3.0, c3), (2.0, c2), (1.0, c1), (0.0, c0)):
                out = jnp.where(hi == k, c, out)
            return out

        r = sel(v, q, p, p, t, v)
        g = sel(t, v, v, q, p, p)
        b = sel(p, p, t, v, v, q)
    else:  # xyz
        X, Y, Z = x[:, 0], x[:, 1], x[:, 2]
        r = 3.2404813432005266 * X - 1.5371515162713185 * Y - 0.498536326168888 * Z
        g = -0.9692549499965682 * X + 1.8759900014898907 * Y + 0.0415559265582928 * Z
        b = 0.0556466391351772 * X - 0.2040413383665112 * Y + 1.0573110696453443 * Z
    rgb = jnp.stack([r, g, b], axis=1)
    return jnp.concatenate([rgb, x[:, 3:]], axis=1)


if __name__ == "__main__":
    key = jax.random.PRNGKey(0)
    N, C, H, W = 2, 4, 16, 16
    k1, _ = jax.random.split(key)
    base = jax.random.uniform(k1, (N, C, H, W), dtype=jnp.float32)
    # make channel 0 a plausible hue in [0, 2*pi] (harmless for xyz too)
    x = base.at[:, 0].set(base[:, 0] * _TWO_PI)

    ok = True
    for space in ("hsv", "xyz"):
        y = jax.block_until_ready(dvr_color_from_space(x, enable=True, space=space))
        y_ref = _reference(x, space)
        ok &= bool(np.allclose(np.asarray(y), np.asarray(y_ref), atol=1e-5, rtol=1e-5))
        ok &= y.shape == x.shape and y.dtype == x.dtype

    # enable=False path: identity
    y_id = jax.block_until_ready(dvr_color_from_space(x, enable=False, space="hsv"))
    ok &= bool(np.allclose(np.asarray(y_id), np.asarray(x)))

    if ok:
        print("KERNEL_OK")
    else:
        print("MISMATCH")
</pallas_src>

<mosaic_0001>
module attributes {stable_mosaic.version = 11 : i64} {
  func.func @_hsv_to_rgb_kernel(%arg0: i32, %arg1: i32, %arg2: memref<1x3x8x128xf32, #tpu.memory_space<vmem>>, %arg3: memref<1x3x8x128xf32, #tpu.memory_space<vmem>>) attributes {dimension_semantics = [#tpu.dimension_semantics<parallel>, #tpu.dimension_semantics<parallel>], iteration_bounds = array<i64: 2, 1>, scalar_prefetch = 0 : i64, scratch_operands = 0 : i64, tpu.core_type = #tpu.core_type<tc>, window_params = [{transform_indices = @transform_0, window_bounds = array<i64: 1, 3, 8, 128>}, {transform_indices = @transform_1, window_bounds = array<i64: 1, 3, 8, 128>}]} {
    %c0 = arith.constant 0 : index
    %c0_0 = arith.constant 0 : index
    %c0_1 = arith.constant 0 : index
    %c0_2 = arith.constant 0 : index
    %0 = vector.load %arg2[%c0, %c0_0, %c0_1, %c0_2] : memref<1x3x8x128xf32, #tpu.memory_space<vmem>>, vector<1x3x8x128xf32>
    %1 = vector.extract_strided_slice %0 {offsets = [0, 0, 0, 0], sizes = [1, 1, 8, 128], strides = [1, 1, 1, 1]} : vector<1x3x8x128xf32> to vector<1x1x8x128xf32>
    %2 = vector.shape_cast %1 : vector<1x1x8x128xf32> to vector<8x128xf32>
    %cst = arith.constant 0.159154937 : f32
    %3 = vector.broadcast %cst : f32 to vector<8x128xf32>
    %4 = arith.mulf %2, %3 : vector<8x128xf32>
    %5 = vector.extract_strided_slice %0 {offsets = [0, 1, 0, 0], sizes = [1, 1, 8, 128], strides = [1, 1, 1, 1]} : vector<1x3x8x128xf32> to vector<1x1x8x128xf32>
    %6 = vector.shape_cast %5 : vector<1x1x8x128xf32> to vector<8x128xf32>
    %7 = vector.extract_strided_slice %0 {offsets = [0, 2, 0, 0], sizes = [1, 1, 8, 128], strides = [1, 1, 1, 1]} : vector<1x3x8x128xf32> to vector<1x1x8x128xf32>
    %8 = vector.shape_cast %7 : vector<1x1x8x128xf32> to vector<8x128xf32>
    %cst_3 = arith.constant 6.000000e+00 : f32
    %9 = vector.broadcast %cst_3 : f32 to vector<8x128xf32>
    %10 = arith.mulf %4, %9 : vector<8x128xf32>
    %cst_4 = arith.constant 6.000000e+00 : f32
    %11 = vector.broadcast %cst_4 : f32 to vector<8x128xf32>
    %12 = arith.remf %10, %11 : vector<8x128xf32>
    %cst_5 = arith.constant 0.000000e+00 : f32
    %13 = vector.broadcast %cst_5 : f32 to vector<8x128xf32>
    %14 = arith.cmpf one, %12, %13 : vector<8x128xf32>
    %cst_6 = arith.constant 0.000000e+00 : f32
    %15 = vector.broadcast %cst_6 : f32 to vector<8x128xf32>
    %16 = arith.cmpf olt, %12, %15 : vector<8x128xf32>
    %cst_7 = arith.constant 0.000000e+00 : f32
    %17 = arith.cmpf olt, %cst_4, %cst_7 : f32
    %18 = vector.broadcast %17 : i1 to vector<8x128xi1>
    %19 = vector.broadcast %18 : vector<8x128xi1> to vector<8x128xi1>
    %20 = arith.xori %16, %19 : vector<8x128xi1>
    %21 = arith.andi %20, %14 : vector<8x128xi1>
    %22 = vector.broadcast %cst_4 : f32 to vector<8x128xf32>
    %23 = arith.addf %12, %22 : vector<8x128xf32>
    %24 = arith.select %21, %23, %12 : vector<8x128xi1>, vector<8x128xf32>
    %25 = math.floor %24 : vector<8x128xf32>
    %26 = arith.subf %24, %25 : vector<8x128xf32>
    %cst_8 = arith.constant 1.000000e+00 : f32
    %27 = vector.broadcast %cst_8 : f32 to vector<8x128xf32>
    %28 = arith.subf %27, %6 : vector<8x128xf32>
    %29 = arith.mulf %8, %28 : vector<8x128xf32>
    %30 = arith.mulf %26, %6 : vector<8x128xf32>
    %cst_9 = arith.constant 1.000000e+00 : f32
    %31 = vector.broadcast %cst_9 : f32 to vector<8x128xf32>
    %32 = arith.subf %31, %30 : vector<8x128xf32>
    %33 = arith.mulf %8, %32 : vector<8x128xf32>
    %cst_10 = arith.constant 1.000000e+00 : f32
    %34 = vector.broadcast %cst_10 : f32 to vector<8x128xf32>
    %35 = arith.subf %34, %26 : vector<8x128xf32>
    %36 = arith.mulf %35, %6 : vector<8x128xf32>
    %cst_11 = arith.constant 1.000000e+00 : f32
    %37 = vector.broadcast %cst_11 : f32 to vector<8x128xf32>
    %38 = arith.subf %37, %36 : vector<8x128xf32>
    %39 = arith.mulf %8, %38 : vector<8x128xf32>
    %cst_12 = arith.constant 0.000000e+00 : f32
    %40 = vector.broadcast %cst_12 : f32 to vector<8x128xf32>
    %41 = arith.cmpf oeq, %25, %40 : vector<8x128xf32>
    %cst_13 = arith.constant 1.000000e+00 : f32
    %42 = vector.broadcast %cst_13 : f32 to vector<8x128xf32>
    %43 = arith.cmpf oeq, %25, %42 : vector<8x128xf32>
    %cst_14 = arith.constant 2.000000e+00 : f32
    %44 = vector.broadcast %cst_14 : f32 to vector<8x128xf32>
    %45 = arith.cmpf oeq, %25, %44 : vector<8x128xf32>
    %cst_15 = arith.constant 3.000000e+00 : f32
    %46 = vector.broadcast %cst_15 : f32 to vector<8x128xf32>
    %47 = arith.cmpf oeq, %25, %46 : vector<8x128xf32>
    %cst_16 = arith.constant 4.000000e+00 : f32
    %48 = vector.broadcast %cst_16 : f32 to vector<8x128xf32>
    %49 = arith.cmpf oeq, %25, %48 : vector<8x128xf32>
    %50 = arith.select %49, %39, %8 : vector<8x128xi1>, vector<8x128xf32>
    %51 = arith.select %47, %29, %50 : vector<8x128xi1>, vector<8x128xf32>
    %52 = arith.select %45, %29, %51 : vector<8x128xi1>, vector<8x128xf32>
    %53 = arith.select %43, %33, %52 : vector<8x128xi1>, vector<8x128xf32>
    %54 = arith.select %41, %8, %53 : vector<8x128xi1>, vector<8x128xf32>
    %55 = arith.select %49, %29, %29 : vector<8x128xi1>, vector<8x128xf32>
    %56 = arith.select %47, %33, %55 : vector<8x128xi1>, vector<8x128xf32>
    %57 = arith.select %45, %8, %56 : vector<8x128xi1>, vector<8x128xf32>
    %58 = arith.select %43, %8, %57 : vector<8x128xi1>, vector<8x128xf32>
    %59 = arith.select %41, %39, %58 : vector<8x128xi1>, vector<8x128xf32>
    %60 = arith.select %49, %8, %33 : vector<8x128xi1>, vector<8x128xf32>
    %61 = arith.select %47, %8, %60 : vector<8x128xi1>, vector<8x128xf32>
    %62 = arith.select %45, %39, %61 : vector<8x128xi1>, vector<8x128xf32>
    %63 = arith.select %43, %29, %62 : vector<8x128xi1>, vector<8x128xf32>
    %64 = arith.select %41, %29, %63 : vector<8x128xi1>, vector<8x128xf32>
    %c0_17 = arith.constant 0 : index
    %c0_18 = arith.constant 0 : index
    %c0_19 = arith.constant 0 : index
    %c0_20 = arith.constant 0 : index
    %65 = vector.load %arg3[%c0_17, %c0_18, %c0_19, %c0_20] : memref<1x3x8x128xf32, #tpu.memory_space<vmem>>, vector<1x1x8x128xf32>
    %66 = vector.shape_cast %65 : vector<1x1x8x128xf32> to vector<8x128xf32>
    %67 = vector.shape_cast %54 : vector<8x128xf32> to vector<1x1x8x128xf32>
    tpu.vector_store %arg3[%c0_17, %c0_18, %c0_19, %c0_20], %67 {strides = array<i32>} : memref<1x3x8x128xf32, #tpu.memory_space<vmem>>, vector<1x1x8x128xf32>,
    %c0_21 = arith.constant 0 : index
    %c1 = arith.constant 1 : index
    %c0_22 = arith.constant 0 : index
    %c0_23 = arith.constant 0 : index
    %68 = vector.load %arg3[%c0_21, %c1, %c0_22, %c0_23] : memref<1x3x8x128xf32, #tpu.memory_space<vmem>>, vector<1x1x8x128xf32>
    %69 = vector.shape_cast %68 : vector<1x1x8x128xf32> to vector<8x128xf32>
    %70 = vector.shape_cast %59 : vector<8x128xf32> to vector<1x1x8x128xf32>
    tpu.vector_store %arg3[%c0_21, %c1, %c0_22, %c0_23], %70 {strides = array<i32>} : memref<1x3x8x128xf32, #tpu.memory_space<vmem>>, vector<1x1x8x128xf32>,
    %c0_24 = arith.constant 0 : index
    %c2 = arith.constant 2 : index
    %c0_25 = arith.constant 0 : index
    %c0_26 = arith.constant 0 : index
    %71 = vector.load %arg3[%c0_24, %c2, %c0_25, %c0_26] : memref<1x3x8x128xf32, #tpu.memory_space<vmem>>, vector<1x1x8x128xf32>
    %72 = vector.shape_cast %71 : vector<1x1x8x128xf32> to vector<8x128xf32>
    %73 = vector.shape_cast %64 : vector<8x128xf32> to vector<1x1x8x128xf32>
    tpu.vector_store %arg3[%c0_24, %c2, %c0_25, %c0_26], %73 {strides = array<i32>} : memref<1x3x8x128xf32, #tpu.memory_space<vmem>>, vector<1x1x8x128xf32>,
    return
  }
  func.func @transform_0(%arg0: i32, %arg1: i32) -> (i32, i32, i32, i32) {
    %c0_i32 = arith.constant 0 : i32
    %c0_i32_0 = arith.constant 0 : i32
    %c0_i32_1 = arith.constant 0 : i32
    return %arg0, %c0_i32, %arg1, %c0_i32_0 : i32, i32, i32, i32
  }
  func.func @transform_1(%arg0: i32, %arg1: i32) -> (i32, i32, i32, i32) {
    %c0_i32 = arith.constant 0 : i32
    %c0_i32_0 = arith.constant 0 : i32
    %c0_i32_1 = arith.constant 0 : i32
    return %arg0, %c0_i32, %arg1, %c0_i32_0 : i32, i32, i32, i32
  }
}

</mosaic_0001>

<bundles_post_ra>
// kernel: dvr_color_from_space.1
= control target key start
LH: loop header
LB: loop body
LE: loop exit
PB: predicated region body
PF: predicated region fallthrough
CT: control target
= control target key end

     0   :  { %s357_s6 = smov 0   ;;  %s359_s7 = smov 0   ;;  %s406_s0 = inlined_call_operand.vmem [shape: f32[2,3,8,128], index: 0, kind: input, shape index: {}]   ;;  %s407_s1 = inlined_call_operand.vmem [shape: f32[2,3,8,128], index: 1, kind: output, shape index: {}]  }
   0x1   :  { %s361_s8 = smov 0  }
   0x2 LB: > { %s23_s9 = sadd.s32 1, %s341_s7  ;;  %p291_p0 = scmp.ge.s32.totalorder %s345_s8, 1  ;;  %s345_s8 = sphi %s361_s8, %s11_s8   ;;  %s341_s7 = sphi %s359_s7, %s409_s7   ;;  %s337_s6 = sphi %s357_s6, %s408_s6  }
   0x3   : > { %p25_p1 = scmp.ge.s32.totalorder %s23_s9, 2  ;;  %p106_p2 = scmp.lt.s32.totalorder %s345_s8, 3 }
   0x5   : > { %s411_s9 = smov (%p25_p1, %s23_s9), 0  ;;  %p107_p3 = pnand %p291_p0, %p106_p2 }
   0x6   : > { %p132_p4 = scmp.lt.s32.totalorder (!%p107_p3), %s337_s6, 1 }
   0x7   : > { %110 = sbr.rel (%p107_p3) target bundleno = 58 (0x3a), region = 24 }
   0xc   : > { %s413_s6 = smov (!%p132_p4, %s337_s6), 1 }
   0xd   : > { %s298_s10 = smul.u32 24, %s413_s6 }
   0xf   : > { %s139_s13 = scalar_lea.vmem %s406_s0, %s298_s10  ;;  %s147_s16 = scalar_lea.vmem %s407_s1, %s298_s10 }
  0x10   : > { %v148_v0 = vld [vmem:[%s139_s13] sm:$0xff]  ;;  %v149_v15 = vld [vmem:[%s139_s13 + $0x8] sm:$0xff]  ;;  %v150_v18 = vld [vmem:[%s139_s13 + $0x10] sm:$0xff] }
  0x11   : > { %v151_v1 = vmul.f32 0.15915494, %v148_v0  ;;  %v171_v17 = vsub.f32 1.0, %v149_v15 }
  0x13   : > { %v152_v2 = vmul.f32 6.0, %v151_v1  ;;  %v172_v21 = vmul.f32 %v171_v17, %v150_v18 }
  0x15   : > { %v153_v3 = vand.u32 2147483647, %v152_v2  ;;  %v162_v8 = vand.u32 2147483648, %v152_v2 }
  0x17   : > { %v155_v4 = vmul.f32 0.16666667, %v153_v3 }
  0x19   : > { %v156_v5 = vfloor.f32 %v155_v4 }
  0x1b   : > { %v157_v6 = vmul.f32 6.0, %v156_v5 }
  0x1d   : > { %v158_v7 = vsub.f32 %v153_v3, %v157_v6 }
  0x1f   : > { %vm159_vm0 = vcmp.eq.f32.partialorder %v158_v7, 6.0 }
  0x20   : > { %v160_v9 = vsel %vm159_vm0, 0.0, %v158_v7 }
  0x21   : > { %v161_v10 = vand.u32 2147483647, %v160_v9 }
  0x23   : > { %v163_v11 = vor.u32 %v162_v8, %v161_v10 }
  0x25   : > { %vm164_vm1 = vcmp.ne.f32.partialorder %v163_v11, 0.0  ;;  %vm165_vm2 = vcmp.lt.f32.partialorder %v163_v11, 0.0  ;;  %v167_v12 = vadd.f32 6.0, %v163_v11 }
  0x26   : > { %vm166_vm3 = vmand %vm165_vm2, %vm164_vm1 }
  0x27   : > { %v168_v13 = vsel %vm166_vm3, %v167_v12, %v163_v11 }
  0x28   : > { %v169_v14 = vfloor.f32 %v168_v13 }
  0x2a   : > { %v170_v16 = vsub.f32 %v168_v13, %v169_v14  ;;  %vm183_vm4 = vcmp.eq.f32.partialorder %v169_v14, 3.0  ;;  %vm184_vm5 = vcmp.eq.f32.partialorder %v169_v14, 4.0  ;;  %vm182_vm6 = vcmp.eq.f32.partialorder %v169_v14, 2.0 }
  0x2b   : > { %vm181_vm7 = vcmp.eq.f32.partialorder %v169_v14, 1.0  ;;  %vm180_vm8 = vcmp.eq.f32.partialorder %v169_v14, 0.0 }
  0x2c   : > { %v173_v19 = vmul.f32 %v170_v16, %v149_v15  ;;  %v176_v20 = vsub.f32 1.0, %v170_v16 }
  0x2e   : > { %v174_v22 = vsub.f32 1.0, %v173_v19  ;;  %v177_v23 = vmul.f32 %v176_v20, %v149_v15 }
  0x30   : > { %v175_v24 = vmul.f32 %v174_v22, %v150_v18  ;;  %v178_v25 = vsub.f32 1.0, %v177_v23 }
  0x32   : > { %v179_v26 = vmul.f32 %v178_v25, %v150_v18  ;;  %v190_v27 = vsel %vm183_vm4, %v175_v24, %v172_v21  ;;  %v194_v28 = vsel %vm184_vm5, %v150_v18, %v175_v24 }
  0x33   : > { %v191_v29 = vsel %vm182_vm6, %v150_v18, %v190_v27  ;;  %v195_v30 = vsel %vm183_vm4, %v150_v18, %v194_v28 }
  0x34   : > { %v185_v31 = vsel %vm184_vm5, %v179_v26, %v150_v18  ;;  %v192_v32 = vsel %vm181_vm7, %v150_v18, %v191_v29  ;;  %v196_v33 = vsel %vm182_vm6, %v179_v26, %v195_v30 }
  0x35   : > { %v186_v34 = vsel %vm183_vm4, %v172_v21, %v185_v31  ;;  %v193_v35 = vsel %vm180_vm8, %v179_v26, %v192_v32  ;;  %v197_v36 = vsel %vm181_vm7, %v172_v21, %v196_v33 }
  0x36   : > { %v187_v37 = vsel %vm182_vm6, %v172_v21, %v186_v34  ;;  %294 = vst [vmem:[%s147_s16 + $0x8] sm:$0xff] %v193_v35  ;;  %v198_v38 = vsel %vm180_vm8, %v172_v21, %v197_v36 }
  0x37   : > { %v188_v39 = vsel %vm181_vm7, %v175_v24, %v187_v37  ;;  %295 = vst [vmem:[%s147_s16 + $0x10] sm:$0xff] %v198_v38 }
  0x38   : > { %v189_v40 = vsel %vm180_vm8, %v150_v18, %v188_v39 }
  0x39   : > { %199 = vst [vmem:[%s147_s16] sm:$0xff] %v189_v40 }
  0x3a PF: > { %s11_s8 = sadd.s32 1, %s345_s8   ;;  %s408_s6 = smov %s341_s7 }
  0x3b   : > { %p8_p5 = scmp.ge.s32.totalorder %s11_s8, 4   ;;  %s409_s7 = smov %s411_s9 }
  0x3d   :  { %10 = sbr.rel (!%p8_p5) target bundleno = 2 (0x2), region = 56 }

</bundles_post_ra>
